<compile_context>
chip_gen: v7x
topology: tpu7x:2x2x1
jax: 0.10.0
libtpu: 0.0.40
codegen_flags: <defaults>
</compile_context>

<pallas_src>
import functools
import math

import jax
import jax.numpy as jnp
from jax import lax
from jax.experimental import pallas as pl
from jax.experimental.pallas import tpu as pltpu


VMEM_LIMIT_BYTES = 48 * 1024 * 1024  # safe on v5e/v6e (128 MiB) and v7x (64 MiB)


def _compiler_params(sem):
    return pltpu.CompilerParams(dimension_semantics=sem,
                                vmem_limit_bytes=VMEM_LIMIT_BYTES)


def _pick_tile(dim, pref):
    """Largest tile <= pref that divides dim (dims here are nice multiples)."""
    if dim <= pref:
        return dim
    t = pref
    while t > 1 and dim % t:
        t //= 2
    return max(t, 1)


def _apply_act(y, act):
    if act == "relu":
        return jnp.maximum(y, 0.0)
    if act == "gelu":
        # TODO(synk): PhoBERT uses exact (erf) GELU; tanh approximation used here.
        return jax.nn.gelu(y, approximate=True)
    return y


# ------------------------- linear + bias (+act), full-K blocks -------------------------

def _linear_kernel(x_ref, w_ref, b_ref, o_ref, *, act):
    y = (jnp.dot(x_ref[...], w_ref[...], preferred_element_type=jnp.float32)
         + b_ref[...].astype(jnp.float32))
    o_ref[...] = _apply_act(y, act).astype(o_ref.dtype)


def pallas_linear(x, w, b, act="none", out_dtype=jnp.bfloat16, tm=512, tn=1152):
    """y = act(x @ w + b).  x:(M,K) bf16, w:(K,N) bf16, b:(N,) f32 -> (M,N).
    K is kept whole per block; weights stay VMEM-resident across the M axis."""
    M, K = x.shape
    N = w.shape[1]
    tm = _pick_tile(M, tm)
    tn = _pick_tile(N, tn)
    grid = (M // tm, N // tn)
    return pl.pallas_call(
        functools.partial(_linear_kernel, act=act),
        out_shape=jax.ShapeDtypeStruct((M, N), out_dtype),
        grid=grid,
        in_specs=[
            pl.BlockSpec((tm, K), lambda i, j: (i, 0)),
            pl.BlockSpec((K, tn), lambda i, j: (0, j)),
            pl.BlockSpec((1, tn), lambda i, j: (0, j)),
        ],
        out_specs=pl.BlockSpec((tm, tn), lambda i, j: (i, j)),
        compiler_params=_compiler_params(("parallel", "parallel")),
    )(x, w, b.reshape(1, N))


# --------------- linear + bias + residual + LayerNorm (fused, full-K) ---------------

def _linear_res_ln_kernel(x_ref, w_ref, b_ref, r_ref, g_ref, be_ref, o_ref, *, eps):
    y = (jnp.dot(x_ref[...], w_ref[...], preferred_element_type=jnp.float32)
         + b_ref[...].astype(jnp.float32) + r_ref[...].astype(jnp.float32))
    mu = jnp.mean(y, axis=-1, keepdims=True)
    yc = y - mu
    var = jnp.mean(yc * yc, axis=-1, keepdims=True)
    y = (yc * lax.rsqrt(var + eps) * g_ref[...].astype(jnp.float32)
         + be_ref[...].astype(jnp.float32))
    o_ref[...] = y.astype(o_ref.dtype)


def pallas_linear_residual_layernorm(x, w, b, res, gamma, beta, eps=1e-5,
                                     out_dtype=jnp.bfloat16, tm=256):
    """LayerNorm(x @ w + b + res), full K and N per block, grid only over rows."""
    M, K = x.shape
    N = w.shape[1]
    tm = _pick_tile(M, tm)
    return pl.pallas_call(
        functools.partial(_linear_res_ln_kernel, eps=eps),
        out_shape=jax.ShapeDtypeStruct((M, N), out_dtype),
        grid=(M // tm,),
        in_specs=[
            pl.BlockSpec((tm, K), lambda i: (i, 0)),
            pl.BlockSpec((K, N), lambda i: (0, 0)),   # resident across M
            pl.BlockSpec((1, N), lambda i: (0, 0)),
            pl.BlockSpec((tm, N), lambda i: (i, 0)),
            pl.BlockSpec((1, N), lambda i: (0, 0)),
            pl.BlockSpec((1, N), lambda i: (0, 0)),
        ],
        out_specs=pl.BlockSpec((tm, N), lambda i: (i, 0)),
        compiler_params=_compiler_params(("parallel",)),
    )(x, w, b.reshape(1, N), res, gamma.reshape(1, N), beta.reshape(1, N))


# --------------- fused FFN: fc1 + GELU + fc2 + residual + LayerNorm ---------------

def _ffn_res_ln_kernel(x_ref, w1_ref, b1_ref, w2_ref, b2_ref, g_ref, be_ref,
                       o_ref, *, eps):
    x = x_ref[...]
    h = (jnp.dot(x, w1_ref[...], preferred_element_type=jnp.float32)
         + b1_ref[...].astype(jnp.float32))
    h = _apply_act(h, "gelu")
    y = (jnp.dot(h.astype(jnp.bfloat16), w2_ref[...],
                 preferred_element_type=jnp.float32)
         + b2_ref[...].astype(jnp.float32) + x.astype(jnp.float32))  # residual = input
    mu = jnp.mean(y, axis=-1, keepdims=True)
    yc = y - mu
    var = jnp.mean(yc * yc, axis=-1, keepdims=True)
    y = (yc * lax.rsqrt(var + eps) * g_ref[...].astype(jnp.float32)
         + be_ref[...].astype(jnp.float32))
    o_ref[...] = y.astype(o_ref.dtype)


def pallas_ffn_residual_layernorm(x, w1, b1, w2, b2, gamma, beta, eps=1e-5,
                                  out_dtype=jnp.bfloat16, tm=128):
    """LayerNorm(GELU(x@w1+b1)@w2 + b2 + x); the (tm, I) intermediate stays in VMEM."""
    M, H = x.shape
    I = w1.shape[1]
    tm = _pick_tile(M, tm)
    return pl.pallas_call(
        functools.partial(_ffn_res_ln_kernel, eps=eps),
        out_shape=jax.ShapeDtypeStruct((M, H), out_dtype),
        grid=(M // tm,),
        in_specs=[
            pl.BlockSpec((tm, H), lambda i: (i, 0)),
            pl.BlockSpec((H, I), lambda i: (0, 0)),   # fc1 weights resident across M
            pl.BlockSpec((1, I), lambda i: (0, 0)),
            pl.BlockSpec((I, H), lambda i: (0, 0)),   # fc2 weights resident across M
            pl.BlockSpec((1, H), lambda i: (0, 0)),
            pl.BlockSpec((1, H), lambda i: (0, 0)),
            pl.BlockSpec((1, H), lambda i: (0, 0)),
        ],
        out_specs=pl.BlockSpec((tm, H), lambda i: (i, 0)),
        compiler_params=_compiler_params(("parallel",)),
    )(x, w1, b1.reshape(1, I), w2, b2.reshape(1, H),
      gamma.reshape(1, H), beta.reshape(1, H))


# ----------------------------- embeddings add + LayerNorm -----------------------------

def _emb_ln_kernel(w_ref, p_ref, t_ref, g_ref, b_ref, o_ref, *, eps):
    x = (w_ref[...].astype(jnp.float32) + p_ref[...].astype(jnp.float32)
         + t_ref[...].astype(jnp.float32))
    mu = jnp.mean(x, axis=-1, keepdims=True)
    xc = x - mu
    var = jnp.mean(xc * xc, axis=-1, keepdims=True)
    y = (xc * lax.rsqrt(var + eps) * g_ref[...].astype(jnp.float32)
         + b_ref[...].astype(jnp.float32))
    o_ref[...] = y.astype(o_ref.dtype)


def pallas_embed_layernorm(word, pos, typ, gamma, beta, eps=1e-5,
                           out_dtype=jnp.bfloat16, ts=256):
    """LayerNorm(word + pos + type) fused; avoids an f32 (B*S,H) HBM temporary."""
    B, S, H = word.shape
    ts = _pick_tile(S, ts)
    return pl.pallas_call(
        functools.partial(_emb_ln_kernel, eps=eps),
        out_shape=jax.ShapeDtypeStruct((B, S, H), out_dtype),
        grid=(B, S // ts),
        in_specs=[
            pl.BlockSpec((1, ts, H), lambda i, j: (i, j, 0)),
            pl.BlockSpec((1, ts, H), lambda i, j: (0, j, 0)),
            pl.BlockSpec((1, 1, H), lambda i, j: (0, 0, 0)),
            pl.BlockSpec((1, 1, H), lambda i, j: (0, 0, 0)),
            pl.BlockSpec((1, 1, H), lambda i, j: (0, 0, 0)),
        ],
        out_specs=pl.BlockSpec((1, ts, H), lambda i, j: (i, j, 0)),
        compiler_params=_compiler_params(("parallel", "parallel")),
    )(word, pos, typ, gamma.reshape(1, 1, H), beta.reshape(1, 1, H))


# ----------------------------- attention (contiguous QKV block) -----------------------------

def _attention_kernel(qkv_ref, o_ref, *, n_heads, head_dim):
    # qkv_ref block: (1, S, 3H) contiguous; scale already folded into Q weights.
    # TODO(synk): per-head 64-lane slices kept (batched 3D dot would need an in-kernel
    # head reshape/transpose); contexts are written directly to o_ref (no concat).
    H = n_heads * head_dim
    for h in range(n_heads):
        lo = h * head_dim
        qh = qkv_ref[0, :, lo:lo + head_dim]
        kh = qkv_ref[0, :, H + lo:H + lo + head_dim]
        vh = qkv_ref[0, :, 2 * H + lo:2 * H + lo + head_dim]
        # q @ k^T without materializing a transpose
        s = lax.dot_general(qh, kh, (((1,), (1,)), ((), ())),
                            preferred_element_type=jnp.float32)
        s = s - jnp.max(s, axis=-1, keepdims=True)
        p = jnp.exp(s)
        p = p * pl.reciprocal(jnp.sum(p, axis=-1, keepdims=True), approx=True)
        ctx = jnp.dot(p.astype(vh.dtype), vh, preferred_element_type=jnp.float32)
        o_ref[0, :, lo:lo + head_dim] = ctx.astype(o_ref.dtype)


def pallas_attention_from_qkv(qkv, B, S, H, n_heads):
    """qkv: (B*S, 3H) fused projection. One contiguous (1,S,3H) block per batch element."""
    head_dim = H // n_heads
    qkv3 = qkv.reshape(B, S, 3 * H)
    return pl.pallas_call(
        functools.partial(_attention_kernel, n_heads=n_heads, head_dim=head_dim),
        out_shape=jax.ShapeDtypeStruct((B, S, H), jnp.bfloat16),
        grid=(B,),
        in_specs=[pl.BlockSpec((1, S, 3 * H), lambda b: (b, 0, 0))],
        out_specs=pl.BlockSpec((1, S, H), lambda b: (b, 0, 0)),
        compiler_params=_compiler_params(("parallel",)),
    )(qkv3)


# ----------------------------- fused pooler + classifier head -----------------------------

def _cls_head_kernel(cls_ref, pw_ref, pb_ref, w1_ref, b1_ref, w2_ref, b2_ref, o_ref):
    pooled = jnp.tanh(jnp.dot(cls_ref[...], pw_ref[...],
                              preferred_element_type=jnp.float32)
                      + pb_ref[...].astype(jnp.float32))
    h1 = (jnp.dot(pooled.astype(jnp.bfloat16), w1_ref[...],
                  preferred_element_type=jnp.float32)
          + b1_ref[...].astype(jnp.float32))
    h1 = jnp.maximum(h1, 0.0)                      # Dropout(0.5) is identity in eval mode
    logits = (jnp.dot(h1.astype(jnp.bfloat16), w2_ref[...],
                      preferred_element_type=jnp.float32)
              + b2_ref[...].astype(jnp.float32))
    o_ref[...] = jax.nn.sigmoid(logits)


def pallas_classifier_head(cls, pool_w, pool_b, clf1_w, clf1_b,
                           clf2_w_pad, clf2_b_pad, num_cls):
    B, H = cls.shape
    N1 = clf1_w.shape[1]
    n_pad = clf2_w_pad.shape[1]                    # lane-dense padded output (prebuilt)
    out = pl.pallas_call(
        _cls_head_kernel,
        out_shape=jax.ShapeDtypeStruct((B, n_pad), jnp.float32),
        grid=(1,),
        in_specs=[
            pl.BlockSpec((B, H), lambda i: (0, 0)),
            pl.BlockSpec((H, H), lambda i: (0, 0)),
            pl.BlockSpec((1, H), lambda i: (0, 0)),
            pl.BlockSpec((H, N1), lambda i: (0, 0)),
            pl.BlockSpec((1, N1), lambda i: (0, 0)),
            pl.BlockSpec((N1, n_pad), lambda i: (0, 0)),
            pl.BlockSpec((1, n_pad), lambda i: (0, 0)),
        ],
        out_specs=pl.BlockSpec((B, n_pad), lambda i: (0, 0)),
        compiler_params=_compiler_params(("arbitrary",)),
    )(cls, pool_w, pool_b.reshape(1, H), clf1_w, clf1_b.reshape(1, N1),
      clf2_w_pad, clf2_b_pad.reshape(1, n_pad))
    return out[:, :num_cls]


# ----------------------------- model (JAX glue) -----------------------------

def encoder_layer(h, p, B, S, n_heads):
    """One post-LN BERT/RoBERTa encoder layer. h: (B*S, H) bf16. 4 pallas_calls."""
    H = h.shape[1]
    qkv = pallas_linear(h, p["qkv_w"], p["qkv_b"], tn=1152)        # fused QKV: (M, 3H)
    ctx = pallas_attention_from_qkv(qkv, B, S, H, n_heads)         # (B, S, H) merged heads
    ctx = ctx.reshape(B * S, H)
    # attention output projection + residual + LN1 (fused)
    h = pallas_linear_residual_layernorm(ctx, p["o_w"], p["o_b"], h,
                                         p["ln1_g"], p["ln1_b"])
    # FFN: fc1 + GELU + fc2 + residual + LN2 all fused in one kernel
    h = pallas_ffn_residual_layernorm(h, p["fc1_w"], p["fc1_b"],
                                      p["fc2_w"], p["fc2_b"],
                                      p["ln2_g"], p["ln2_b"])
    return h


def model_classify_ie_forward(token_ids, params, cfg):
    """token_ids: (B, S) int32 -> sigmoid logits (B, num_cls) f32."""
    B, S = token_ids.shape
    H = cfg["hidden"]

    # --- embeddings (table lookups are glue; add+LN fused in Pallas) ---
    # TODO(synk): no attention-mask handling; correct for all-ones attention masks.
    word = jnp.take(params["word_emb"], token_ids, axis=0)                  # (B,S,H) f32
    pos_ids = jnp.arange(S, dtype=jnp.int32) + cfg["pad_token_id"] + 1      # RoBERTa style
    pos = jnp.take(params["pos_emb"], pos_ids, axis=0)[None, :, :]          # (1,S,H)
    typ = params["type_emb"].reshape(1, 1, H)                               # (1,1,H)
    h = pallas_embed_layernorm(word, pos, typ,
                               params["emb_ln_g"], params["emb_ln_b"])      # (B,S,H) bf16
    h = h.reshape(B * S, H)

    # --- encoder ---
    for lp in params["layers"]:
        h = encoder_layer(h, lp, B, S, cfg["heads"])

    # --- pooler (model(x)[1]) + clf head, fused into one kernel ---
    cls = h.reshape(B, S, H)[:, 0, :]                                       # (B,H) bf16
    out = pallas_classifier_head(cls, params["pool_w"], params["pool_b"],
                                 params["clf1_w"], params["clf1_b"],
                                 params["clf2_w_pad"], params["clf2_b_pad"],
                                 cfg["num_cls"])
    return out


# ----------------------------- parameter init -----------------------------

def init_params(key, cfg):
    H, I = cfg["hidden"], cfg["intermediate"]
    V, P = cfg["vocab"], cfg["max_pos"]
    nl, ncls = cfg["layers"], cfg["num_cls"]
    scale = 1.0 / math.sqrt(H // cfg["heads"])

    keys = iter(jax.random.split(key, 16 + 8 * nl))

    def nrm(shape, std=0.02):
        return jax.random.normal(next(keys), shape, jnp.float32) * std

    n_pad = ((ncls + 127) // 128) * 128
    clf2_w = nrm((256, ncls))
    clf2_b = jnp.zeros((ncls,), jnp.float32)

    params = {
        "word_emb": nrm((V, H)),
        "pos_emb": nrm((P, H)),
        "type_emb": nrm((1, H)),
        "emb_ln_g": jnp.ones((H,), jnp.float32),
        "emb_ln_b": jnp.zeros((H,), jnp.float32),
        "pool_w": nrm((H, H)).astype(jnp.bfloat16),
        "pool_b": jnp.zeros((H,), jnp.float32),
        "clf1_w": nrm((H, 256)).astype(jnp.bfloat16),
        "clf1_b": jnp.zeros((256,), jnp.float32),
        # lane-padded clf2, built once at init (not per forward)
        "clf2_w_pad": jnp.zeros((256, n_pad), jnp.float32).at[:, :ncls]
                         .set(clf2_w).astype(jnp.bfloat16),
        "clf2_b_pad": jnp.zeros((n_pad,), jnp.float32).at[:ncls].set(clf2_b),
        "layers": [],
    }
    for _ in range(nl):
        qw, kw, vw = nrm((H, H)), nrm((H, H)), nrm((H, H))
        qb = jnp.zeros((H,), jnp.float32)
        lp = {
            # fused QKV; 1/sqrt(head_dim) folded into the Q columns (weight + bias)
            "qkv_w": jnp.concatenate([qw * scale, kw, vw], axis=1).astype(jnp.bfloat16),
            "qkv_b": jnp.concatenate([qb * scale, jnp.zeros((2 * H,), jnp.float32)]),
            "o_w": nrm((H, H)).astype(jnp.bfloat16), "o_b": jnp.zeros((H,), jnp.float32),
            "ln1_g": jnp.ones((H,), jnp.float32), "ln1_b": jnp.zeros((H,), jnp.float32),
            "fc1_w": nrm((H, I)).astype(jnp.bfloat16), "fc1_b": jnp.zeros((I,), jnp.float32),
            "fc2_w": nrm((I, H)).astype(jnp.bfloat16), "fc2_b": jnp.zeros((H,), jnp.float32),
            "ln2_g": jnp.ones((H,), jnp.float32), "ln2_b": jnp.zeros((H,), jnp.float32),
        }
        params["layers"].append(lp)
    return params


# ----------------------------- main -----------------------------

if __name__ == "__main__":
    # TODO(synk): phobert-base has 12 layers and vocab=64001; reduced to 2 layers / vocab=1000
    # for a small synthetic run (per-layer semantics identical, clf head is 768->256->num_cls).
    cfg = dict(
        vocab=1000,
        hidden=768,
        heads=12,
        layers=2,
        intermediate=3072,
        max_pos=130,
        num_cls=6,
        pad_token_id=1,
    )

    key = jax.random.PRNGKey(0)
    pkey, dkey = jax.random.split(key)
    params = init_params(pkey, cfg)

    B, S = 2, 8
    token_ids = jax.random.randint(dkey, (B, S), 2, cfg["vocab"], dtype=jnp.int32)

    out = model_classify_ie_forward(token_ids, params, cfg)
    out = jax.block_until_ready(out)

    assert out.shape == (B, cfg["num_cls"]), out.shape
    assert bool(jnp.all((out >= 0.0) & (out <= 1.0)))
    print("KERNEL_OK")
</pallas_src>

<mosaic_0001>
module attributes {stable_mosaic.version = 11 : i64} {
  func.func @_emb_ln_kernel(%arg0: i32, %arg1: i32, %arg2: memref<1x8x768xf32, #tpu.memory_space<vmem>>, %arg3: memref<1x8x768xf32, #tpu.memory_space<vmem>>, %arg4: memref<1x1x768xf32, #tpu.memory_space<vmem>>, %arg5: memref<1x1x768xf32, #tpu.memory_space<vmem>>, %arg6: memref<1x1x768xf32, #tpu.memory_space<vmem>>, %arg7: memref<1x8x768xbf16, #tpu.memory_space<vmem>>) attributes {dimension_semantics = [#tpu.dimension_semantics<parallel>, #tpu.dimension_semantics<parallel>], iteration_bounds = array<i64: 2, 1>, scalar_prefetch = 0 : i64, scratch_operands = 0 : i64, tpu.core_type = #tpu.core_type<tc>, window_params = [{transform_indices = @transform_0, window_bounds = array<i64: 1, 8, 768>}, {transform_indices = @transform_1, window_bounds = array<i64: 1, 8, 768>}, {pipeline_mode = #tpu.pipeline_mode<synchronous>, transform_indices = @transform_2, window_bounds = array<i64: 1, 1, 768>}, {pipeline_mode = #tpu.pipeline_mode<synchronous>, transform_indices = @transform_3, window_bounds = array<i64: 1, 1, 768>}, {pipeline_mode = #tpu.pipeline_mode<synchronous>, transform_indices = @transform_4, window_bounds = array<i64: 1, 1, 768>}, {transform_indices = @transform_5, window_bounds = array<i64: 1, 8, 768>}]} {
    %c0 = arith.constant 0 : index
    %c0_0 = arith.constant 0 : index
    %c0_1 = arith.constant 0 : index
    %0 = vector.load %arg2[%c0, %c0_0, %c0_1] : memref<1x8x768xf32, #tpu.memory_space<vmem>>, vector<1x8x768xf32>
    %c0_2 = arith.constant 0 : index
    %c0_3 = arith.constant 0 : index
    %c0_4 = arith.constant 0 : index
    %1 = vector.load %arg3[%c0_2, %c0_3, %c0_4] : memref<1x8x768xf32, #tpu.memory_space<vmem>>, vector<1x8x768xf32>
    %2 = arith.addf %0, %1 : vector<1x8x768xf32>
    %c0_5 = arith.constant 0 : index
    %c0_6 = arith.constant 0 : index
    %c0_7 = arith.constant 0 : index
    %3 = vector.load %arg4[%c0_5, %c0_6, %c0_7] : memref<1x1x768xf32, #tpu.memory_space<vmem>>, vector<1x1x768xf32>
    %4 = vector.broadcast %3 : vector<1x1x768xf32> to vector<1x8x768xf32>
    %5 = arith.addf %2, %4 : vector<1x8x768xf32>
    %cst = arith.constant dense<0.000000e+00> : vector<1x8xf32>
    %6 = vector.multi_reduction <add>, %5, %cst [2] : vector<1x8x768xf32> to vector<1x8xf32>
    %7 = vector.shape_cast %6 : vector<1x8xf32> to vector<1x8x1xf32>
    %cst_8 = arith.constant 7.680000e+02 : f32
    %8 = vector.broadcast %cst_8 : f32 to vector<1x8x1xf32>
    %9 = arith.divf %7, %8 : vector<1x8x1xf32>
    %10 = vector.broadcast %9 : vector<1x8x1xf32> to vector<1x8x768xf32>
    %11 = arith.subf %5, %10 : vector<1x8x768xf32>
    %12 = arith.mulf %11, %11 : vector<1x8x768xf32>
    %cst_9 = arith.constant dense<0.000000e+00> : vector<1x8xf32>
    %13 = vector.multi_reduction <add>, %12, %cst_9 [2] : vector<1x8x768xf32> to vector<1x8xf32>
    %14 = vector.shape_cast %13 : vector<1x8xf32> to vector<1x8x1xf32>
    %cst_10 = arith.constant 7.680000e+02 : f32
    %15 = vector.broadcast %cst_10 : f32 to vector<1x8x1xf32>
    %16 = arith.divf %14, %15 : vector<1x8x1xf32>
    %cst_11 = arith.constant 9.99999974E-6 : f32
    %17 = vector.broadcast %cst_11 : f32 to vector<1x8x1xf32>
    %18 = arith.addf %16, %17 : vector<1x8x1xf32>
    %19 = math.rsqrt %18 : vector<1x8x1xf32>
    %20 = vector.broadcast %19 : vector<1x8x1xf32> to vector<1x8x768xf32>
    %21 = arith.mulf %11, %20 : vector<1x8x768xf32>
    %c0_12 = arith.constant 0 : index
    %c0_13 = arith.constant 0 : index
    %c0_14 = arith.constant 0 : index
    %22 = vector.load %arg5[%c0_12, %c0_13, %c0_14] : memref<1x1x768xf32, #tpu.memory_space<vmem>>, vector<1x1x768xf32>
    %23 = vector.broadcast %22 : vector<1x1x768xf32> to vector<1x8x768xf32>
    %24 = arith.mulf %21, %23 : vector<1x8x768xf32>
    %c0_15 = arith.constant 0 : index
    %c0_16 = arith.constant 0 : index
    %c0_17 = arith.constant 0 : index
    %25 = vector.load %arg6[%c0_15, %c0_16, %c0_17] : memref<1x1x768xf32, #tpu.memory_space<vmem>>, vector<1x1x768xf32>
    %26 = vector.broadcast %25 : vector<1x1x768xf32> to vector<1x8x768xf32>
    %27 = arith.addf %24, %26 : vector<1x8x768xf32>
    %28 = arith.truncf %27 : vector<1x8x768xf32> to vector<1x8x768xbf16>
    %c0_18 = arith.constant 0 : index
    %c0_19 = arith.constant 0 : index
    %c0_20 = arith.constant 0 : index
    %29 = vector.load %arg7[%c0_18, %c0_19, %c0_20] : memref<1x8x768xbf16, #tpu.memory_space<vmem>>, vector<1x8x768xbf16>
    tpu.vector_store %arg7[%c0_18, %c0_19, %c0_20], %28 {strides = array<i32>} : memref<1x8x768xbf16, #tpu.memory_space<vmem>>, vector<1x8x768xbf16>,
    return
  }
  func.func @transform_0(%arg0: i32, %arg1: i32) -> (i32, i32, i32) {
    %c0_i32 = arith.constant 0 : i32
    %c0_i32_0 = arith.constant 0 : i32
    return %arg0, %arg1, %c0_i32 : i32, i32, i32
  }
  func.func @transform_1(%arg0: i32, %arg1: i32) -> (i32, i32, i32) {
    %c0_i32 = arith.constant 0 : i32
    %c0_i32_0 = arith.constant 0 : i32
    %c0_i32_1 = arith.constant 0 : i32
    return %c0_i32, %arg1, %c0_i32_0 : i32, i32, i32
  }
  func.func @transform_2(%arg0: i32, %arg1: i32) -> (i32, i32, i32) {
    %c0_i32 = arith.constant 0 : i32
    %c0_i32_0 = arith.constant 0 : i32
    %c0_i32_1 = arith.constant 0 : i32
    %c0_i32_2 = arith.constant 0 : i32
    return %c0_i32, %c0_i32_0, %c0_i32_1 : i32, i32, i32
  }
  func.func @transform_3(%arg0: i32, %arg1: i32) -> (i32, i32, i32) {
    %c0_i32 = arith.constant 0 : i32
    %c0_i32_0 = arith.constant 0 : i32
    %c0_i32_1 = arith.constant 0 : i32
    %c0_i32_2 = arith.constant 0 : i32
    return %c0_i32, %c0_i32_0, %c0_i32_1 : i32, i32, i32
  }
  func.func @transform_4(%arg0: i32, %arg1: i32) -> (i32, i32, i32) {
    %c0_i32 = arith.constant 0 : i32
    %c0_i32_0 = arith.constant 0 : i32
    %c0_i32_1 = arith.constant 0 : i32
    %c0_i32_2 = arith.constant 0 : i32
    return %c0_i32, %c0_i32_0, %c0_i32_1 : i32, i32, i32
  }
  func.func @transform_5(%arg0: i32, %arg1: i32) -> (i32, i32, i32) {
    %c0_i32 = arith.constant 0 : i32
    %c0_i32_0 = arith.constant 0 : i32
    return %arg0, %arg1, %c0_i32 : i32, i32, i32
  }
}

</mosaic_0001>

<bundles_post_ra>
// kernel: tpu_custom_call.1
= control target key start
LH: loop header
LB: loop body
LE: loop exit
PB: predicated region body
PF: predicated region fallthrough
CT: control target
= control target key end

     0   :  { %10 = vsyncpa [#allocation3], 0  ;;  %s1213_s0 = inlined_call_operand.hbm [shape: f32[2,8,768], index: 0, kind: input, shape index: {}]   ;;  %s1214_s1 = inlined_call_operand.hbm [shape: f32[1,8,768], index: 1, kind: input, shape index: {}]   ;;  %s1215_s2 = inlined_call_operand.vmem [shape: f32[1,1,768], index: 2, kind: input, shape index: {}]   ;;  %s1216_s3 = inlined_call_operand.hbm [shape: f32[1,1,768], index: 3, kind: input, shape index: {}]   ;;  %s1217_s4 = inlined_call_operand.vmem [shape: f32[1,1,768], index: 4, kind: input, shape index: {}]   ;;  %s1218_s5 = inlined_call_operand.hbm [shape: bf16[2,8,768], index: 5, kind: output, shape index: {}]  }
   0x1   :  { %12 = vsyncpa [#allocation3 + $0x1], 0 }
   0x2   :  { %13 = vsyncpa [#allocation6], 0 }
   0x3   :  { %14 = vsyncpa [#allocation4], 0 }
   0x4   :  { %16 = vsyncpa [#allocation4 + $0x1], 0  ;;  %s927_s18 = smov 0   ;;  %s929_s19 = smov 0  }
   0x5   :  { %s931_s20 = smov 0   ;;  %s933_s21 = smov 0  }
   0x6   :  { %s935_s22 = smov 0   ;;  %s937_s23 = smov 0  }
   0x7 LB: > { %s610_s24 = sadd.s32 4294967295, %s891_s23   ;;  %s611_s25 = sadd.s32 4294967294, %s891_s23   ;;  %s891_s23 = sphi %s937_s23, %s22_s23   ;;  %s887_s22 = sphi %s935_s22, %s1241_s22   ;;  %s883_s21 = sphi %s933_s21, %s1240_s21   ;;  %s879_s20 = sphi %s931_s20, %s1239_s20   ;;  %s875_s19 = sphi %s929_s19, %s1238_s19   ;;  %s871_s18 = sphi %s927_s18, %s1237_s18  }
   0x8   : > { %p56_p0 = scmp.ne.s32.totalorder %s875_s19, %s871_s18  ;;  %p961_p1 = scmp.eq.s32.totalorder %s610_s24, 0 }
   0x9   : > { %p965_p2 = scmp.eq.s32.totalorder %s610_s24, 1  ;;  %p177_p3 = scmp.eq.s32.totalorder %s611_s25, 1 }
   0xa   : > { %s1223_s26 = scalar_select %p961_p1, 1, 0 }
   0xb   : > { %s1224_s27 = scalar_select %p965_p2, 1, 0 }
   0xc   : > { %p971_p4 = por %p961_p1, %p56_p0  ;;  %p612_p5 = scmp.ge.s32.totalorder %s891_s23, 1 }
   0xd   : > { %p976_p6 = por %p177_p3, %p56_p0  ;;  %p184_p7 = scmp.lt.s32.totalorder %s891_s23, 3 }
   0xe   : > { %s1225_s28 = scalar_select %p971_p4, 1, 0 }
   0xf   : > { %s1226_s29 = scalar_select %p976_p6, 1, 0 }
  0x10   : > { %p981_p8 = pnand %p612_p5, %p184_p7  ;;  %s893_s6 = smov [#allocation5]  }
  0x11   : > { %s200_s7 = sshll.u32 %s893_s6, 4  ;;  %s894_s8 = smov [#allocation7]   ;;  %s201_s7 = int_to_ptr.vmem [resolvable:$true] %s200_s7 }
  0x12   : > { %s1227_s30 = scalar_select %p981_p8, 1, 0 }
  0x13   : > { %p646_p10 = pneg %p981_p8  ;;  %s214_s9 = sshll.u32 %s894_s8, 4  ;;  %s994_s9 = int_to_ptr.vmem [resolvable:$true] %s214_s9 }
  0x14   : > { %s719_s13 = scalar_lea.hbm %s1214_s1, 768 }
  0x15   : > { %p990_p11 = pnand %p646_p10, %p961_p1  ;;  %p720_p12 = scmp.ne.s32.totalorder %s1214_s1, %s719_s13 }
  0x16   : > { %p726_p5 = scmp.lt.u32.totalorder %s719_s13, %s1214_s1 }
  0x17   : > { %p721_p13 = pneg %p990_p11 }
  0x19   : > { %p722_p0 = pnand %p721_p13, %p720_p12 }
  0x1b   : > { %p723_p3 = pneg %p722_p0 }
  0x1d   : > { %p728_p7 = pnand %p726_p5, %p723_p3 }
  0x1f   : > { %731 = shalt.err (!%p728_p7)
}
  0x20   : > { %s732_s24 = scalar_lea.vmem %s201_s7, 768  ;;  %p740_p1 = scmp.lt.s32.totalorder %s201_s7, %s201_s7 }
  0x21   : > { %p733_p10 = scmp.ne.s32.totalorder %s201_s7, %s732_s24  ;;  %p741_p4 = scmp.lt.s32.totalorder %s732_s24, %s732_s24 }
  0x23   : > { %p735_p9 = pnand %p733_p10, %p721_p13  ;;  %p742_p8 = por %p741_p4, %p740_p1 }
  0x25   : > { %p736_p6 = pneg %p735_p9 }
  0x27   : > { %p743_p2 = pnand %p742_p8, %p736_p6 }
  0x29   : > { %746 = shalt.err (!%p743_p2)
}
  0x2a   : > { %649 = dma.hbm_to_vmem [thread:$0]  (!%p990_p11), %s1214_s1, 768, %s201_s7, [#allocation6]  }
  0x2b   : > { %s747_s12 = scalar_lea.hbm %s1216_s3, 96 }
  0x2c   : > { %p748_p9 = scmp.ne.s32.totalorder %s1216_s3, %s747_s12  ;;  %p754_p2 = scmp.lt.u32.totalorder %s747_s12, %s1216_s3 }
  0x2e   : > { %p750_p1 = pnand %p748_p9, %p721_p13 }
  0x30   : > { %p751_p4 = pneg %p750_p1 }
  0x32   : > { %p756_p6 = pnand %p754_p2, %p751_p4 }
  0x34   : > { %759 = shalt.err (!%p756_p6)
}
  0x35   : > { %s760_s7 = scalar_lea.vmem %s994_s9, 96  ;;  %p768_p3 = scmp.lt.s32.totalorder %s994_s9, %s994_s9 }
  0x36   : > { %p761_p8 = scmp.ne.s32.totalorder %s994_s9, %s760_s7  ;;  %p769_p5 = scmp.lt.s32.totalorder %s760_s7, %s760_s7 }
  0x38   : > { %p763_p12 = pnand %p761_p8, %p721_p13  ;;  %p770_p7 = por %p769_p5, %p768_p3 }
  0x3a   : > { %p764_p0 = pneg %p763_p12 }
  0x3c   : > { %p771_p10 = pnand %p770_p7, %p764_p0 }
  0x3e   : > { %774 = shalt.err (!%p771_p10)
}
  0x3f   : > { %652 = dma.hbm_to_vmem [thread:$0]  (!%p990_p11), %s1216_s3, 96, %s994_s9, [#allocation6]  }
  0x40   : > { %s34_s25 = sadd.s32 1, %s887_s22  ;;  %s43_s6 = sadd.s32 1, %s879_s20 }
  0x41   : > { %p36_p13 = scmp.ge.s32.totalorder %s34_s25, 2  ;;  %p50_p9 = scmp.ne.s32.totalorder %s879_s20, %s875_s19 }
  0x42   : > { %p51_p1 = scmp.eq.s32.totalorder %s891_s23, 0  ;;  %p663_p4 = scmp.lt.s32.totalorder %s891_s23, 2 }
  0x43   : > { %s1243_s25 = smov (%p36_p13, %s34_s25), 0  ;;  %p1229_p6 = scmp.ne.s32.totalorder %s1224_s27, 0 }
  0x44   : > { %p52_p2 = por %p51_p1, %p50_p9  ;;  %s38_s8 = ssub.s32 %s887_s22, %s1243_s25 }
  0x45   : > { %p1053_p8 = por %p1229_p6, %p50_p9  ;;  %s228_s11 = sand.u32 1, %s879_s20  }
  0x46   : > { %p41_p12 = scmp.eq.s32.totalorder %s38_s8, 0  ;;  %s629_s9 = smul.u32 48, %s228_s11 }
  0x47   : > { %p1060_p11 = pnand %p663_p4, %p52_p2  ;;  %s630_s14 = smul.u32 768, %s887_s22 }
  0x48   : > { %s1065_s13 = scalar_select %p41_p12, %s879_s20, %s43_s6  }
  0x49   : > { %s232_s15 = scalar_lea.vmem [#allocation2], %s629_s9  ;;  %s1071_s17 = scalar_lea.hbm %s1213_s0, %s630_s14 }
  0x4a   : > { %s242_s16 = sshll.u32 %s232_s15, 4  ;;  %s229_s24 = scalar_lea.sflag [#allocation3], %s228_s11  ;;  %s1073_s16 = int_to_ptr.vmem [resolvable:$true] %s242_s16 }
  0x4b   : > { %s775_s8 = scalar_lea.hbm %s1071_s17, 768  ;;  %p777_p3 = pneg %p1060_p11 }
  0x4c   : > { %p776_p0 = scmp.ne.s32.totalorder %s1071_s17, %s775_s8  ;;  %s780_s14 = scalar_lea.hbm %s1213_s0, 1536 }
  0x4d   : > { %p781_p10 = scmp.lt.u32.totalorder %s1071_s17, %s1213_s0  ;;  %p782_p13 = scmp.lt.u32.totalorder %s780_s14, %s775_s8 }
  0x4e   : > { %p778_p5 = pnand %p777_p3, %p776_p0  ;;  %p784_p1 = scmp.lt.u32.totalorder %s775_s8, %s1071_s17 }
  0x4f   : > { %p783_p9 = por %p782_p13, %p781_p10 }
  0x50   : > { %p779_p7 = pneg %p778_p5 }
  0x51   : > { %p785_p4 = por %p784_p1, %p783_p9 }
  0x53   : > { %p786_p2 = pnand %p785_p4, %p779_p7 }
  0x55   : > { %789 = shalt.err (!%p786_p2)
}
  0x56   : > { %s790_s11 = scalar_lea.vmem %s1073_s16, 768  ;;  %s895_s7 = smov [#allocation2]  }
  0x57   : > { %p791_p6 = scmp.ne.s32.totalorder %s1073_s16, %s790_s11  ;;  %s795_s6 = sshll.u32 %s895_s7, 4  ;;  %s796_s6 = int_to_ptr.vmem [resolvable:$false] %s795_s6 }
  0x58   : > { %s797_s9 = scalar_lea.vmem %s796_s6, 1536  ;;  %p798_p5 = scmp.lt.s32.totalorder %s1073_s16, %s796_s6 }
  0x59   : > { %p793_p12 = pnand %p791_p6, %p777_p3  ;;  %p799_p10 = scmp.lt.s32.totalorder %s797_s9, %s790_s11 }
  0x5b   : > { %p794_p0 = pneg %p793_p12  ;;  %p800_p13 = por %p799_p10, %p798_p5 }
  0x5d   : > { %p801_p9 = pnand %p800_p13, %p794_p0 }
  0x5f   : > { %804 = shalt.err (!%p801_p9)
}
  0x60   : > { %656 = dma.hbm_to_vmem [thread:$0]  (!%p1060_p11), %s1071_s17, 768, %s1073_s16, %s229_s24  }
  0x61   : > { %p1232_p7 = scmp.ne.s32.totalorder %s1227_s30, 0 }
  0x62   : > { %s1103_s8 = sand.u32 (!%p1232_p7), 1, %s875_s19   ;;  %p1233_p3 = scmp.ne.s32.totalorder (!%p1232_p7), %s1225_s28, 0 }
  0x63   : > { %251 = sbr.rel (%p1232_p7) target bundleno = 468 (0x1d4), region = 40  ;;  %s254_s15 = scalar_lea.sflag (!%p1232_p7), [#allocation3], %s1103_s8 }
  0x64   : > { %s631_s14 = smul.u32 (!%p1232_p7), 48, %s1103_s8 }
  0x66   : > { %s1107_s27 = scalar_lea.vmem (!%p1232_p7), [#allocation2], %s631_s14 }
  0x6a   : > { %858 = dma.done.wait (%p1233_p3), %s254_s15, 768  }
  0x6b   : > { %860 = vsyncadd (%p1233_p3), %s254_s15, 4294966528  ;;  %p1234_p11 = scmp.ne.s32.totalorder %s1223_s26, 0 }
  0x6d   : > { %862 = dma.done.wait (%p1234_p11), [#allocation6], 864  }
  0x6e   : > { %864 = vsyncadd (%p1234_p11), [#allocation6], 4294966432  ;;  %v312_v0 = vlaneseq  ;;  %v292_v2 = vld [vmem:[%s1107_s27] sm:$0xff]  ;;  %v293_v3 = vld [vmem:[%s1107_s27 + $0x8] sm:$0xff]  ;;  %s632_s16 = smul.u32 24, %s1103_s8  ;;  %s896_s15 = smov [#allocation8]  }
  0x6f   : > { %v294_v4 = vld [vmem:[%s1107_s27 + $0x10] sm:$0xff]  ;;  %v295_v5 = vld [vmem:[%s1107_s27 + $0x18] sm:$0xff]  ;;  %v296_v13 = vld [vmem:[%s1107_s27 + $0x20] sm:$0xff]  ;;  %s633_s17 = smul.u32 384, %s883_s21  ;;  %s489_s21 = scalar_lea.sflag [#allocation4], %s1103_s8 }
  0x70   : > { %v313_v1 = vshrl.u32 %v312_v0, 7  ;;  %v298_v10 = vld [vmem:[#allocation5] sm:$0xff]  ;;  %v299_v11 = vld [vmem:[#allocation5 + $0x8] sm:$0xff]  ;;  %v300_v12 = vld [vmem:[#allocation5 + $0x10] sm:$0xff]  ;;  %s291_s24 = scalar_lea.vmem [#allocation8], %s632_s16 }
  0x71   : > { %v301_v14 = vld [vmem:[#allocation5 + $0x18] sm:$0xff]  ;;  %v302_v15 = vld [vmem:[#allocation5 + $0x20] sm:$0xff]  ;;  %v304_v16 = vadd.f32 %v298_v10, %v292_v2  ;;  %v305_v17 = vadd.f32 %v299_v11, %v293_v3  ;;  %v306_v18 = vadd.f32 %v300_v12, %v294_v4  ;;  %v303_v28 = vld [vmem:[#allocation5 + $0x28] sm:$0xff]  ;;  %s505_s11 = sshll.u32 %s291_s24, 4  ;;  %s1164_s9 = scalar_lea.hbm %s1218_s5, %s633_s17  ;;  %s1166_s11 = int_to_ptr.vmem [resolvable:$true] %s505_s11 }
  0x72   : > { %v1121_v6 = vsub.s32 0, %v313_v1  ;;  %v1123_v7 = vsub.s32 1, %v313_v1  ;;  %v1125_v8 = vsub.s32 2, %v313_v1  ;;  %v1127_v9 = vsub.s32 3, %v313_v1  ;;  %v310_v21 = vld [vmem:[%s1215_s2] sm:$0x3f] }
  0x73   : > { %v1130_v19 = vsub.s32 4, %v313_v1  ;;  %v307_v20 = vadd.f32 %v301_v14, %v295_v5  ;;  %v1135_v22 = vsub.s32 5, %v313_v1  ;;  %v297_v27 = vld [vmem:[%s1107_s27 + $0x28] sm:$0xff]  ;;  %v308_v29 = vadd.f32 %v302_v15, %v296_v13  ;;  %v385_v2 = vld [vmem:[#allocation7] sm:$0x3f]  ;;  %s805_s14 = scalar_lea.vmem %s1166_s11, 384 }
  0x74   : > { %v315_v23 = vrot.slane %v310_v21, %v1121_v6  ;;  %v319_v24 = vrot.slane %v310_v21, %v1123_v7  ;;  %v323_v25 = vrot.slane %v310_v21, %v1125_v8  ;;  %v327_v26 = vrot.slane %v310_v21, %v1127_v9  ;;  %v423_v3 = vld [vmem:[%s1217_s4] sm:$0x3f]  ;;  %p806_p1 = scmp.ne.s32.totalorder %s1166_s11, %s805_s14  ;;  %s809_s27 = sshll.u32 %s896_s15, 4  ;;  %s810_s27 = int_to_ptr.vmem [resolvable:$false] %s809_s27 }
  0x75   : > { %v331_v30 = vrot.slane %v310_v21, %v1130_v19  ;;  %v309_v34 = vadd.f32 %v303_v28, %v297_v27  ;;  %v335_v35 = vrot.slane %v310_v21, %v1135_v22  ;;  %v390_v4 = vrot.slane %v385_v2, %v1121_v6  ;;  %s811_s26 = scalar_lea.vmem %s810_s27, 768  ;;  %p812_p6 = scmp.lt.s32.totalorder %s1166_s11, %s810_s27 }
  0x76   : > { %v342_v31 = vadd.f32 %v315_v23, %v304_v16  ;;  %v343_v32 = vadd.f32 %v319_v24, %v305_v17  ;;  %v344_v33 = vadd.f32 %v323_v25, %v306_v18  ;;  %v345_v36 = vadd.f32 %v327_v26, %v307_v20  ;;  %p807_p4 = pnand %p806_p1, %p1053_p8  ;;  %p813_p12 = scmp.lt.s32.totalorder %s811_s26, %s805_s14 }
  0x77   : > { %v346_v38 = vadd.f32 %v331_v30, %v308_v29  ;;  %v347_v40 = vadd.f32 %v335_v35, %v309_v34  ;;  %v394_v5 = vrot.slane %v385_v2, %v1123_v7  ;;  %v398_v10 = vrot.slane %v385_v2, %v1125_v8 }
  0x78   : > { %v348_v37 = vadd.f32 %v343_v32, %v342_v31  ;;  %v402_v11 = vrot.slane %v385_v2, %v1127_v9  ;;  %v406_v12 = vrot.slane %v385_v2, %v1130_v19  ;;  %v410_v13 = vrot.slane %v385_v2, %v1135_v22  ;;  %p808_p2 = pneg %p807_p4  ;;  %p814_p0 = por %p813_p12, %p812_p6 }
  0x79   : > { %v436_v15 = vrot.slane %v423_v3, %v1125_v8  ;;  %v440_v16 = vrot.slane %v423_v3, %v1127_v9  ;;  %v428_v17 = vrot.slane %v423_v3, %v1121_v6  ;;  %v432_v18 = vrot.slane %v423_v3, %v1123_v7 }
  0x7a   : > { %v349_v39 = vadd.f32 %v348_v37, %v344_v33  ;;  %v444_v25 = vrot.slane %v423_v3, %v1130_v19  ;;  %v448_v26 = vrot.slane %v423_v3, %v1135_v22  ;;  %p815_p5 = pnand %p814_p0, %p808_p2 }
  0x7c   : > { %v350_v41 = vadd.f32 %v349_v39, %v345_v36 }
  0x7e   : > { %v351_v42 = vadd.f32 %v350_v41, %v346_v38 }
  0x80   : > { %v352_v43 = vadd.f32 %v351_v42, %v347_v40 }
  0x82   : > { %353 = vadd.xlane.f32.xlu0 %v352_v43 }
 0x10f   : > { %v354_v44 = vpop.xlane.xlu0 %353 }
 0x110   : > { %v356_v45 = vmul.f32 0.0013020834, %v354_v44 }
 0x112   : > { %v357_v46 = vsub.f32 %v342_v31, %v356_v45  ;;  %v358_v47 = vsub.f32 %v343_v32, %v356_v45  ;;  %v359_v48 = vsub.f32 %v344_v33, %v356_v45  ;;  %v360_v49 = vsub.f32 %v345_v36, %v356_v45 }
 0x113   : > { %v361_v52 = vsub.f32 %v346_v38, %v356_v45  ;;  %v362_v55 = vsub.f32 %v347_v40, %v356_v45 }
 0x114   : > { %v363_v50 = vmul.f32 %v357_v46, %v357_v46  ;;  %v364_v51 = vmul.f32 %v358_v47, %v358_v47  ;;  %v365_v53 = vmul.f32 %v359_v48, %v359_v48  ;;  %v366_v56 = vmul.f32 %v360_v49, %v360_v49 }
 0x115   : > { %v367_v58 = vmul.f32 %v361_v52, %v361_v52  ;;  %v368_v60 = vmul.f32 %v362_v55, %v362_v55 }
 0x116   : > { %v369_v54 = vadd.f32 %v364_v51, %v363_v50 }
 0x118   : > { %v370_v57 = vadd.f32 %v369_v54, %v365_v53 }
 0x11a   : > { %v371_v59 = vadd.f32 %v370_v57, %v366_v56 }
 0x11c   : > { %v372_v61 = vadd.f32 %v371_v59, %v367_v58 }
 0x11e   : > { %v373_v62 = vadd.f32 %v372_v61, %v368_v60 }
 0x120   : > { %374 = vadd.xlane.f32.xlu0 %v373_v62 }
 0x1ad   : > { %v375_v63 = vpop.xlane.xlu0 %374 }
 0x1ae   : > { %v376_v0 = vmul.f32 0.0013020834, %v375_v63 }
 0x1b0   : > { %v377_v1 = vadd.f32 1e-05, %v376_v0 }
 0x1b2   : > { %717 = vrsqrt.f32 %v377_v1 }
 0x1bc   : > { %v718_v14 = vpop.eup %717 }
 0x1bd   : > { %v379_v20 = vmul.f32 %v718_v14, %v357_v46  ;;  %v380_v21 = vmul.f32 %v718_v14, %v358_v47  ;;  %v381_v23 = vmul.f32 %v718_v14, %v359_v48  ;;  %v382_v24 = vmul.f32 %v718_v14, %v360_v49 }
 0x1be   : > { %v383_v27 = vmul.f32 %v718_v14, %v361_v52  ;;  %v384_v28 = vmul.f32 %v718_v14, %v362_v55 }
 0x1bf   : > { %v417_v29 = vmul.f32 %v390_v4, %v379_v20  ;;  %v418_v30 = vmul.f32 %v394_v5, %v380_v21  ;;  %v419_v8 = vmul.f32 %v398_v10, %v381_v23  ;;  %v420_v31 = vmul.f32 %v402_v11, %v382_v24 }
 0x1c0   : > { %v421_v9 = vmul.f32 %v406_v12, %v383_v27  ;;  %v422_v32 = vmul.f32 %v410_v13, %v384_v28 }
 0x1c1   : > { %v455_v6 = vadd.f32 %v428_v17, %v417_v29  ;;  %v456_v7 = vadd.f32 %v432_v18, %v418_v30  ;;  %v457_v33 = vadd.f32 %v436_v15, %v419_v8  ;;  %v458_v34 = vadd.f32 %v440_v16, %v420_v31 }
 0x1c2   : > { %v459_v19 = vadd.f32 %v444_v25, %v421_v9  ;;  %v460_v35 = vadd.f32 %v448_v26, %v422_v32 }
 0x1c3   : > { %v626_v22 = vpack.c.bf16 %v456_v7, %v455_v6  ;;  %v627_v36 = vpack.c.bf16 %v458_v34, %v457_v33 }
 0x1c4   : > { %v628_v37 = vpack.c.bf16 %v460_v35, %v459_v19 }
 0x1c5   : > { %485 = vst [vmem:[%s291_s24] sm:$0xff] %v626_v22  ;;  %486 = vst [vmem:[%s291_s24 + $0x8] sm:$0xff] %v627_v36 }
 0x1c6   : > { %487 = vst [vmem:[%s291_s24 + $0x10] sm:$0xff] %v628_v37 }
 0x1c7   : > { %818 = shalt.err (!%p815_p5)
}
 0x1c8   : > { %s819_s8 = scalar_lea.hbm %s1164_s9, 384  ;;  %s823_s12 = scalar_lea.hbm %s1218_s5, 768 }
 0x1c9   : > { %p820_p10 = scmp.ne.s32.totalorder %s1164_s9, %s819_s8  ;;  %p824_p7 = scmp.lt.u32.totalorder %s1164_s9, %s1218_s5 }
 0x1ca   : > { %p825_p3 = scmp.lt.u32.totalorder %s823_s12, %s819_s8  ;;  %p827_p1 = scmp.lt.u32.totalorder %s819_s8, %s1164_s9 }
 0x1cb   : > { %p821_p13 = pnand %p820_p10, %p1053_p8 }
 0x1cc   : > { %p826_p11 = por %p825_p3, %p824_p7 }
 0x1cd   : > { %p822_p9 = pneg %p821_p13 }
 0x1ce   : > { %p828_p4 = por %p827_p1, %p826_p11 }
 0x1d0   : > { %p829_p2 = pnand %p828_p4, %p822_p9 }
 0x1d2   : > { %832 = shalt.err (!%p829_p2)
}
 0x1d3   : > { %644 = dma.vmem_to_hbm [thread:$0]  (%p1053_p8), %s1166_s11, 384, %s1164_s9, %s489_s21  }
 0x1d4 PF: > { %s517_s24 = sand.u32 1, %s871_s18   ;;  %p1235_p6 = scmp.ne.s32.totalorder %s1226_s29, 0 }
 0x1d5   : > { %p1236_p12 = scmp.ge.s32.totalorder %s891_s23, 2  ;;  %s518_s7 = scalar_lea.sflag [#allocation4], %s517_s24 }
 0x1d7   : > { %p658_p0 = pnand %p1236_p12, %p1235_p6 }
 0x1d9   : > { %866 = dma.done.wait (!%p658_p0), %s518_s7, 384  }
 0x1da   : > { %868 = vsyncadd (!%p658_p0), %s518_s7, 4294966912  ;;  %s22_s23 = sadd.s32 1, %s891_s23   ;;  %s1237_s18 = smov %s875_s19 }
 0x1db   : > { %p19_p5 = scmp.ge.s32.totalorder %s22_s23, 4   ;;  %s1238_s19 = smov %s879_s20 }
 0x1dc   : > { %s1239_s20 = smov %s1065_s13  ;;  %s1240_s21 = smov %s887_s22 }
 0x1dd   : > { %s1241_s22 = smov %s1243_s25  ;;  %21 = sbr.rel (!%p19_p5) target bundleno = 7 (0x7), region = 94 }
 0x1e4   :  { %523 = vsyncpa [#allocation3], 1 }
 0x1e5   :  { %525 = vsyncpa [#allocation3 + $0x1], 1 }
 0x1e6   :  { %526 = vsyncpa [#allocation6], 1 }
 0x1e7   :  { %527 = vsyncpa [#allocation4], 1 }
 0x1e8   :  { %529 = vsyncpa [#allocation4 + $0x1], 1 }

</bundles_post_ra>
